<compile_context>
chip_gen: v7x
topology: tpu7x:2x2x1
jax: 0.10.0
libtpu: 0.0.40
codegen_flags: <defaults>
</compile_context>

<pallas_src>
import functools

import jax
import jax.numpy as jnp
from jax.experimental import pallas as pl
from jax.experimental.pallas import tpu as pltpu

H1, H2, H3 = 128, 256, 256
LN_EPS = 1e-5


def _round_up(x, m):
    return (x + m - 1) // m * m


def _layernorm(h, gamma, beta, inv_d, eps=LN_EPS):
    # sum * (1/D) instead of mean (saves a vector divide); rsqrt -> EUP slot.
    mean = jnp.sum(h, axis=-1, keepdims=True) * inv_d
    cent = h - mean
    var = jnp.sum(cent * cent, axis=-1, keepdims=True) * inv_d
    inv = jax.lax.rsqrt(var + eps)
    return cent * (inv * gamma) + beta


def dqn_kernel(x_ref, w1_ref, w2_ref, w3_ref, w4_ref, vec_ref, o_ref):
    # Packed per-layer vectors (f32): rows 0-2 = b1,g1,be1 ; 3-5 = b2,g2,be2 ;
    # 6-8 = b3,g3,be3 ; row 9 = b4 (zero-padded to the lane-dense output width).
    vec = vec_ref[...]
    b1, g1, be1 = vec[0, :H1], vec[1, :H1], vec[2, :H1]
    b2, g2, be2 = vec[3, :H2], vec[4, :H2], vec[5, :H2]
    b3, g3, be3 = vec[6, :H3], vec[7, :H3], vec[8, :H3]
    n_out = o_ref.shape[-1]
    b4 = vec[9, :n_out]

    x = x_ref[...]  # bf16 [TB, state_size]

    # fc1 -> ln1 -> relu   (MXU gets bf16 operands, accumulates in f32)
    h = jnp.dot(x, w1_ref[...], preferred_element_type=jnp.float32) + b1
    h = jnp.maximum(_layernorm(h, g1, be1, 1.0 / H1), 0.0).astype(jnp.bfloat16)

    # fc2 -> ln2 -> relu
    h = jnp.dot(h, w2_ref[...], preferred_element_type=jnp.float32) + b2
    h = jnp.maximum(_layernorm(h, g2, be2, 1.0 / H2), 0.0).astype(jnp.bfloat16)

    # fc3 -> ln3 -> relu
    h = jnp.dot(h, w3_ref[...], preferred_element_type=jnp.float32) + b3
    h = jnp.maximum(_layernorm(h, g3, be3, 1.0 / H3), 0.0).astype(jnp.bfloat16)

    # Dropout(p=0.2): identity in eval/inference mode.
    # TODO(synk): training-mode dropout (prng mask + 1/(1-p) scaling) not implemented.

    # fc4 (output dim padded to 128 lanes in the wrapper -> unmasked vst)
    out = jnp.dot(h, w4_ref[...], preferred_element_type=jnp.float32) + b4
    o_ref[...] = out.astype(o_ref.dtype)


@functools.partial(jax.jit, static_argnames=("block_b",))
def deep_q_network(state, params, *, block_b=256):
    """state: [B, state_size] f32; params: dict from init_params."""
    B, state_size = state.shape
    action_size = params["w4"].shape[1]

    # Lane-dense output: pad fc4's out dim up to a multiple of 128.
    n_pad = max(128, _round_up(action_size, 128))
    # Batch tile: up to block_b rows, multiple of 8 (MXU/vreg sublanes).
    tb = min(block_b, _round_up(B, 8))
    b_pad = _round_up(B, tb)

    # bf16 matmul operands (resident in VMEM across the whole batch grid).
    w1 = params["w1"].astype(jnp.bfloat16)
    w2 = params["w2"].astype(jnp.bfloat16)
    w3 = params["w3"].astype(jnp.bfloat16)
    w4 = jnp.zeros((H3, n_pad), jnp.bfloat16).at[:, :action_size].set(
        params["w4"].astype(jnp.bfloat16))

    # Pack the 10 small bias/LN vectors into one f32 [10, W] operand.
    vec_w = max(H2, n_pad)

    def row(v, n):
        return jnp.zeros((vec_w,), jnp.float32).at[:n].set(v.reshape(-1))

    vecs = jnp.stack([
        row(params["b1"], H1), row(params["g1"], H1), row(params["be1"], H1),
        row(params["b2"], H2), row(params["g2"], H2), row(params["be2"], H2),
        row(params["b3"], H3), row(params["g3"], H3), row(params["be3"], H3),
        row(params["b4"], action_size),
    ])

    # bf16 activations; pad batch to a multiple of the tile only when needed.
    x = state.astype(jnp.bfloat16)
    if b_pad != B:
        x = jnp.pad(x, ((0, b_pad - B), (0, 0)))

    const_map = lambda i: (0, 0)
    out = pl.pallas_call(
        dqn_kernel,
        out_shape=jax.ShapeDtypeStruct((b_pad, n_pad), jnp.float32),
        grid_spec=pltpu.PrefetchScalarGridSpec(
            num_scalar_prefetch=0,
            grid=(b_pad // tb,),
            in_specs=[
                pl.BlockSpec((tb, state_size), lambda i: (i, 0)),
                pl.BlockSpec(w1.shape, const_map),
                pl.BlockSpec(w2.shape, const_map),
                pl.BlockSpec(w3.shape, const_map),
                pl.BlockSpec(w4.shape, const_map),
                pl.BlockSpec(vecs.shape, const_map),
            ],
            out_specs=pl.BlockSpec((tb, n_pad), lambda i: (i, 0)),
        ),
        compiler_params=pltpu.CompilerParams(
            dimension_semantics=("parallel",)),
    )(x, w1, w2, w3, w4, vecs)

    return out[:B, :action_size]


def init_params(key, state_size, action_size):
    """Deterministic synthetic init (uniform like torch Linear default scale)."""
    def linear(key, fan_in, fan_out):
        k1, k2 = jax.random.split(key)
        bound = 1.0 / (fan_in ** 0.5)
        w = jax.random.uniform(k1, (fan_in, fan_out), jnp.float32, -bound, bound)
        b = jax.random.uniform(k2, (1, fan_out), jnp.float32, -bound, bound)
        return w, b

    keys = jax.random.split(key, 4)
    w1, b1 = linear(keys[0], state_size, H1)
    w2, b2 = linear(keys[1], H1, H2)
    w3, b3 = linear(keys[2], H2, H3)
    w4, b4 = linear(keys[3], H3, action_size)
    return {
        "w1": w1, "b1": b1, "g1": jnp.ones((1, H1), jnp.float32), "be1": jnp.zeros((1, H1), jnp.float32),
        "w2": w2, "b2": b2, "g2": jnp.ones((1, H2), jnp.float32), "be2": jnp.zeros((1, H2), jnp.float32),
        "w3": w3, "b3": b3, "g3": jnp.ones((1, H3), jnp.float32), "be3": jnp.zeros((1, H3), jnp.float32),
        "w4": w4, "b4": b4,
    }


def deep_q_network_ref(state, p):
    """Pure-JAX reference mirroring the kernel's bf16-matmul / f32-LN path."""
    def ln(h, g, b, eps=LN_EPS):
        m = h.mean(-1, keepdims=True)
        v = ((h - m) ** 2).mean(-1, keepdims=True)
        return (h - m) * jax.lax.rsqrt(v + eps) * g + b

    def mm(a, w):
        return jnp.dot(a.astype(jnp.bfloat16), w.astype(jnp.bfloat16),
                       preferred_element_type=jnp.float32)

    h = jnp.maximum(ln(mm(state, p["w1"]) + p["b1"], p["g1"], p["be1"]), 0.0)
    h = jnp.maximum(ln(mm(h, p["w2"]) + p["b2"], p["g2"], p["be2"]), 0.0)
    h = jnp.maximum(ln(mm(h, p["w3"]) + p["b3"], p["g3"], p["be3"]), 0.0)
    return mm(h, p["w4"]) + p["b4"]


if __name__ == "__main__":
    key = jax.random.PRNGKey(0)
    k_state, k_params = jax.random.split(key)

    batch, state_size, action_size = 8, 16, 8
    state = jax.random.normal(k_state, (batch, state_size), jnp.float32)
    params = init_params(k_params, state_size, action_size)

    out = deep_q_network(state, params)
    out = jax.block_until_ready(out)

    ref = deep_q_network_ref(state, params)
    assert out.shape == (batch, action_size)
    assert jnp.allclose(out, ref, atol=2e-2, rtol=2e-2), "mismatch vs JAX reference"

    print("KERNEL_OK")
</pallas_src>

<mosaic_0001>
module attributes {stable_mosaic.version = 11 : i64} {
  func.func @dqn_kernel(%arg0: i32, %arg1: memref<8x16xbf16, #tpu.memory_space<vmem>>, %arg2: memref<16x128xbf16, #tpu.memory_space<vmem>>, %arg3: memref<128x256xbf16, #tpu.memory_space<vmem>>, %arg4: memref<256x256xbf16, #tpu.memory_space<vmem>>, %arg5: memref<256x128xbf16, #tpu.memory_space<vmem>>, %arg6: memref<10x256xf32, #tpu.memory_space<vmem>>, %arg7: memref<8x128xf32, #tpu.memory_space<vmem>>) attributes {dimension_semantics = [#tpu.dimension_semantics<parallel>], iteration_bounds = array<i64: 1>, scalar_prefetch = 0 : i64, scratch_operands = 0 : i64, tpu.core_type = #tpu.core_type<tc>, window_params = [{transform_indices = @transform_0, window_bounds = array<i64: 8, 16>}, {pipeline_mode = #tpu.pipeline_mode<synchronous>, transform_indices = @transform_1, window_bounds = array<i64: 16, 128>}, {pipeline_mode = #tpu.pipeline_mode<synchronous>, transform_indices = @transform_2, window_bounds = array<i64: 128, 256>}, {pipeline_mode = #tpu.pipeline_mode<synchronous>, transform_indices = @transform_3, window_bounds = array<i64: 256, 256>}, {pipeline_mode = #tpu.pipeline_mode<synchronous>, transform_indices = @transform_4, window_bounds = array<i64: 256, 128>}, {pipeline_mode = #tpu.pipeline_mode<synchronous>, transform_indices = @transform_5, window_bounds = array<i64: 10, 256>}, {transform_indices = @transform_6, window_bounds = array<i64: 8, 128>}]} {
    %c0 = arith.constant 0 : index
    %c0_0 = arith.constant 0 : index
    %0 = vector.load %arg6[%c0, %c0_0] : memref<10x256xf32, #tpu.memory_space<vmem>>, vector<10x256xf32>
    %1 = vector.extract_strided_slice %0 {offsets = [0, 0], sizes = [1, 128], strides = [1, 1]} : vector<10x256xf32> to vector<1x128xf32>
    %2 = vector.shape_cast %1 : vector<1x128xf32> to vector<128xf32>
    %3 = vector.extract_strided_slice %0 {offsets = [1, 0], sizes = [1, 128], strides = [1, 1]} : vector<10x256xf32> to vector<1x128xf32>
    %4 = vector.shape_cast %3 : vector<1x128xf32> to vector<128xf32>
    %5 = vector.extract_strided_slice %0 {offsets = [2, 0], sizes = [1, 128], strides = [1, 1]} : vector<10x256xf32> to vector<1x128xf32>
    %6 = vector.shape_cast %5 : vector<1x128xf32> to vector<128xf32>
    %7 = vector.extract_strided_slice %0 {offsets = [3, 0], sizes = [1, 256], strides = [1, 1]} : vector<10x256xf32> to vector<1x256xf32>
    %8 = vector.shape_cast %7 : vector<1x256xf32> to vector<256xf32>
    %9 = vector.extract_strided_slice %0 {offsets = [4, 0], sizes = [1, 256], strides = [1, 1]} : vector<10x256xf32> to vector<1x256xf32>
    %10 = vector.shape_cast %9 : vector<1x256xf32> to vector<256xf32>
    %11 = vector.extract_strided_slice %0 {offsets = [5, 0], sizes = [1, 256], strides = [1, 1]} : vector<10x256xf32> to vector<1x256xf32>
    %12 = vector.shape_cast %11 : vector<1x256xf32> to vector<256xf32>
    %13 = vector.extract_strided_slice %0 {offsets = [6, 0], sizes = [1, 256], strides = [1, 1]} : vector<10x256xf32> to vector<1x256xf32>
    %14 = vector.shape_cast %13 : vector<1x256xf32> to vector<256xf32>
    %15 = vector.extract_strided_slice %0 {offsets = [7, 0], sizes = [1, 256], strides = [1, 1]} : vector<10x256xf32> to vector<1x256xf32>
    %16 = vector.shape_cast %15 : vector<1x256xf32> to vector<256xf32>
    %17 = vector.extract_strided_slice %0 {offsets = [8, 0], sizes = [1, 256], strides = [1, 1]} : vector<10x256xf32> to vector<1x256xf32>
    %18 = vector.shape_cast %17 : vector<1x256xf32> to vector<256xf32>
    %19 = vector.extract_strided_slice %0 {offsets = [9, 0], sizes = [1, 128], strides = [1, 1]} : vector<10x256xf32> to vector<1x128xf32>
    %20 = vector.shape_cast %19 : vector<1x128xf32> to vector<128xf32>
    %c0_1 = arith.constant 0 : index
    %c0_2 = arith.constant 0 : index
    %21 = vector.load %arg1[%c0_1, %c0_2] : memref<8x16xbf16, #tpu.memory_space<vmem>>, vector<8x16xbf16>
    %c0_3 = arith.constant 0 : index
    %c0_4 = arith.constant 0 : index
    %22 = vector.load %arg2[%c0_3, %c0_4] : memref<16x128xbf16, #tpu.memory_space<vmem>>, vector<16x128xbf16>
    %cst = arith.constant dense<0.000000e+00> : vector<8x128xf32>
    %23 = tpu.matmul %21, %22, %cst {dimension_numbers = #tpu.dot_dimension_numbers<[1], [0], [0], [1], [0, 0, 1, 1], [], []>} : vector<8x16xbf16>, vector<16x128xbf16>, vector<8x128xf32> -> vector<8x128xf32>
    %24 = vector.shape_cast %2 : vector<128xf32> to vector<1x128xf32>
    %25 = vector.broadcast %24 : vector<1x128xf32> to vector<8x128xf32>
    %26 = arith.addf %23, %25 : vector<8x128xf32>
    %cst_5 = arith.constant dense<0.000000e+00> : vector<8xf32>
    %27 = vector.multi_reduction <add>, %26, %cst_5 [1] : vector<8x128xf32> to vector<8xf32>
    %28 = vector.shape_cast %27 : vector<8xf32> to vector<8x1xf32>
    %cst_6 = arith.constant 7.812500e-03 : f32
    %29 = vector.broadcast %cst_6 : f32 to vector<8x1xf32>
    %30 = arith.mulf %28, %29 : vector<8x1xf32>
    %31 = vector.broadcast %30 : vector<8x1xf32> to vector<8x128xf32>
    %32 = arith.subf %26, %31 : vector<8x128xf32>
    %33 = arith.mulf %32, %32 : vector<8x128xf32>
    %cst_7 = arith.constant dense<0.000000e+00> : vector<8xf32>
    %34 = vector.multi_reduction <add>, %33, %cst_7 [1] : vector<8x128xf32> to vector<8xf32>
    %35 = vector.shape_cast %34 : vector<8xf32> to vector<8x1xf32>
    %cst_8 = arith.constant 7.812500e-03 : f32
    %36 = vector.broadcast %cst_8 : f32 to vector<8x1xf32>
    %37 = arith.mulf %35, %36 : vector<8x1xf32>
    %cst_9 = arith.constant 9.99999974E-6 : f32
    %38 = vector.broadcast %cst_9 : f32 to vector<8x1xf32>
    %39 = arith.addf %37, %38 : vector<8x1xf32>
    %40 = math.rsqrt %39 : vector<8x1xf32>
    %41 = vector.shape_cast %4 : vector<128xf32> to vector<1x128xf32>
    %42 = vector.broadcast %40 : vector<8x1xf32> to vector<8x128xf32>
    %43 = vector.broadcast %41 : vector<1x128xf32> to vector<8x128xf32>
    %44 = arith.mulf %42, %43 : vector<8x128xf32>
    %45 = arith.mulf %32, %44 : vector<8x128xf32>
    %46 = vector.shape_cast %6 : vector<128xf32> to vector<1x128xf32>
    %47 = vector.broadcast %46 : vector<1x128xf32> to vector<8x128xf32>
    %48 = arith.addf %45, %47 : vector<8x128xf32>
    %cst_10 = arith.constant 0.000000e+00 : f32
    %49 = vector.broadcast %cst_10 : f32 to vector<8x128xf32>
    %50 = arith.maximumf %48, %49 : vector<8x128xf32>
    %51 = arith.truncf %50 : vector<8x128xf32> to vector<8x128xbf16>
    %c0_11 = arith.constant 0 : index
    %c0_12 = arith.constant 0 : index
    %52 = vector.load %arg3[%c0_11, %c0_12] : memref<128x256xbf16, #tpu.memory_space<vmem>>, vector<128x256xbf16>
    %cst_13 = arith.constant dense<0.000000e+00> : vector<8x256xf32>
    %53 = tpu.matmul %51, %52, %cst_13 {dimension_numbers = #tpu.dot_dimension_numbers<[1], [0], [0], [1], [0, 0, 1, 1], [], []>} : vector<8x128xbf16>, vector<128x256xbf16>, vector<8x256xf32> -> vector<8x256xf32>
    %54 = vector.shape_cast %8 : vector<256xf32> to vector<1x256xf32>
    %55 = vector.broadcast %54 : vector<1x256xf32> to vector<8x256xf32>
    %56 = arith.addf %53, %55 : vector<8x256xf32>
    %cst_14 = arith.constant dense<0.000000e+00> : vector<8xf32>
    %57 = vector.multi_reduction <add>, %56, %cst_14 [1] : vector<8x256xf32> to vector<8xf32>
    %58 = vector.shape_cast %57 : vector<8xf32> to vector<8x1xf32>
    %cst_15 = arith.constant 3.906250e-03 : f32
    %59 = vector.broadcast %cst_15 : f32 to vector<8x1xf32>
    %60 = arith.mulf %58, %59 : vector<8x1xf32>
    %61 = vector.broadcast %60 : vector<8x1xf32> to vector<8x256xf32>
    %62 = arith.subf %56, %61 : vector<8x256xf32>
    %63 = arith.mulf %62, %62 : vector<8x256xf32>
    %cst_16 = arith.constant dense<0.000000e+00> : vector<8xf32>
    %64 = vector.multi_reduction <add>, %63, %cst_16 [1] : vector<8x256xf32> to vector<8xf32>
    %65 = vector.shape_cast %64 : vector<8xf32> to vector<8x1xf32>
    %cst_17 = arith.constant 3.906250e-03 : f32
    %66 = vector.broadcast %cst_17 : f32 to vector<8x1xf32>
    %67 = arith.mulf %65, %66 : vector<8x1xf32>
    %cst_18 = arith.constant 9.99999974E-6 : f32
    %68 = vector.broadcast %cst_18 : f32 to vector<8x1xf32>
    %69 = arith.addf %67, %68 : vector<8x1xf32>
    %70 = math.rsqrt %69 : vector<8x1xf32>
    %71 = vector.shape_cast %10 : vector<256xf32> to vector<1x256xf32>
    %72 = vector.broadcast %70 : vector<8x1xf32> to vector<8x256xf32>
    %73 = vector.broadcast %71 : vector<1x256xf32> to vector<8x256xf32>
    %74 = arith.mulf %72, %73 : vector<8x256xf32>
    %75 = arith.mulf %62, %74 : vector<8x256xf32>
    %76 = vector.shape_cast %12 : vector<256xf32> to vector<1x256xf32>
    %77 = vector.broadcast %76 : vector<1x256xf32> to vector<8x256xf32>
    %78 = arith.addf %75, %77 : vector<8x256xf32>
    %cst_19 = arith.constant 0.000000e+00 : f32
    %79 = vector.broadcast %cst_19 : f32 to vector<8x256xf32>
    %80 = arith.maximumf %78, %79 : vector<8x256xf32>
    %81 = arith.truncf %80 : vector<8x256xf32> to vector<8x256xbf16>
    %c0_20 = arith.constant 0 : index
    %c0_21 = arith.constant 0 : index
    %82 = vector.load %arg4[%c0_20, %c0_21] : memref<256x256xbf16, #tpu.memory_space<vmem>>, vector<256x256xbf16>
    %cst_22 = arith.constant dense<0.000000e+00> : vector<8x256xf32>
    %83 = tpu.matmul %81, %82, %cst_22 {dimension_numbers = #tpu.dot_dimension_numbers<[1], [0], [0], [1], [0, 0, 1, 1], [], []>} : vector<8x256xbf16>, vector<256x256xbf16>, vector<8x256xf32> -> vector<8x256xf32>
    %84 = vector.shape_cast %14 : vector<256xf32> to vector<1x256xf32>
    %85 = vector.broadcast %84 : vector<1x256xf32> to vector<8x256xf32>
    %86 = arith.addf %83, %85 : vector<8x256xf32>
    %cst_23 = arith.constant dense<0.000000e+00> : vector<8xf32>
    %87 = vector.multi_reduction <add>, %86, %cst_23 [1] : vector<8x256xf32> to vector<8xf32>
    %88 = vector.shape_cast %87 : vector<8xf32> to vector<8x1xf32>
    %cst_24 = arith.constant 3.906250e-03 : f32
    %89 = vector.broadcast %cst_24 : f32 to vector<8x1xf32>
    %90 = arith.mulf %88, %89 : vector<8x1xf32>
    %91 = vector.broadcast %90 : vector<8x1xf32> to vector<8x256xf32>
    %92 = arith.subf %86, %91 : vector<8x256xf32>
    %93 = arith.mulf %92, %92 : vector<8x256xf32>
    %cst_25 = arith.constant dense<0.000000e+00> : vector<8xf32>
    %94 = vector.multi_reduction <add>, %93, %cst_25 [1] : vector<8x256xf32> to vector<8xf32>
    %95 = vector.shape_cast %94 : vector<8xf32> to vector<8x1xf32>
    %cst_26 = arith.constant 3.906250e-03 : f32
    %96 = vector.broadcast %cst_26 : f32 to vector<8x1xf32>
    %97 = arith.mulf %95, %96 : vector<8x1xf32>
    %cst_27 = arith.constant 9.99999974E-6 : f32
    %98 = vector.broadcast %cst_27 : f32 to vector<8x1xf32>
    %99 = arith.addf %97, %98 : vector<8x1xf32>
    %100 = math.rsqrt %99 : vector<8x1xf32>
    %101 = vector.shape_cast %16 : vector<256xf32> to vector<1x256xf32>
    %102 = vector.broadcast %100 : vector<8x1xf32> to vector<8x256xf32>
    %103 = vector.broadcast %101 : vector<1x256xf32> to vector<8x256xf32>
    %104 = arith.mulf %102, %103 : vector<8x256xf32>
    %105 = arith.mulf %92, %104 : vector<8x256xf32>
    %106 = vector.shape_cast %18 : vector<256xf32> to vector<1x256xf32>
    %107 = vector.broadcast %106 : vector<1x256xf32> to vector<8x256xf32>
    %108 = arith.addf %105, %107 : vector<8x256xf32>
    %cst_28 = arith.constant 0.000000e+00 : f32
    %109 = vector.broadcast %cst_28 : f32 to vector<8x256xf32>
    %110 = arith.maximumf %108, %109 : vector<8x256xf32>
    %111 = arith.truncf %110 : vector<8x256xf32> to vector<8x256xbf16>
    %c0_29 = arith.constant 0 : index
    %c0_30 = arith.constant 0 : index
    %112 = vector.load %arg5[%c0_29, %c0_30] : memref<256x128xbf16, #tpu.memory_space<vmem>>, vector<256x128xbf16>
    %cst_31 = arith.constant dense<0.000000e+00> : vector<8x128xf32>
    %113 = tpu.matmul %111, %112, %cst_31 {dimension_numbers = #tpu.dot_dimension_numbers<[1], [0], [0], [1], [0, 0, 1, 1], [], []>} : vector<8x256xbf16>, vector<256x128xbf16>, vector<8x128xf32> -> vector<8x128xf32>
    %114 = vector.shape_cast %20 : vector<128xf32> to vector<1x128xf32>
    %115 = vector.broadcast %114 : vector<1x128xf32> to vector<8x128xf32>
    %116 = arith.addf %113, %115 : vector<8x128xf32>
    %c0_32 = arith.constant 0 : index
    %c0_33 = arith.constant 0 : index
    %117 = vector.load %arg7[%c0_32, %c0_33] : memref<8x128xf32, #tpu.memory_space<vmem>>, vector<8x128xf32>
    tpu.vector_store %arg7[%c0_32, %c0_33], %116 {strides = array<i32>} : memref<8x128xf32, #tpu.memory_space<vmem>>, vector<8x128xf32>,
    return
  }
  func.func @transform_0(%arg0: i32) -> (i32, i32) {
    %c0_i32 = arith.constant 0 : i32
    %c0_i32_0 = arith.constant 0 : i32
    return %arg0, %c0_i32 : i32, i32
  }
  func.func @transform_1(%arg0: i32) -> (i32, i32) {
    %c0_i32 = arith.constant 0 : i32
    %c0_i32_0 = arith.constant 0 : i32
    %c0_i32_1 = arith.constant 0 : i32
    return %c0_i32, %c0_i32_0 : i32, i32
  }
  func.func @transform_2(%arg0: i32) -> (i32, i32) {
    %c0_i32 = arith.constant 0 : i32
    %c0_i32_0 = arith.constant 0 : i32
    %c0_i32_1 = arith.constant 0 : i32
    return %c0_i32, %c0_i32_0 : i32, i32
  }
  func.func @transform_3(%arg0: i32) -> (i32, i32) {
    %c0_i32 = arith.constant 0 : i32
    %c0_i32_0 = arith.constant 0 : i32
    %c0_i32_1 = arith.constant 0 : i32
    return %c0_i32, %c0_i32_0 : i32, i32
  }
  func.func @transform_4(%arg0: i32) -> (i32, i32) {
    %c0_i32 = arith.constant 0 : i32
    %c0_i32_0 = arith.constant 0 : i32
    %c0_i32_1 = arith.constant 0 : i32
    return %c0_i32, %c0_i32_0 : i32, i32
  }
  func.func @transform_5(%arg0: i32) -> (i32, i32) {
    %c0_i32 = arith.constant 0 : i32
    %c0_i32_0 = arith.constant 0 : i32
    %c0_i32_1 = arith.constant 0 : i32
    return %c0_i32, %c0_i32_0 : i32, i32
  }
  func.func @transform_6(%arg0: i32) -> (i32, i32) {
    %c0_i32 = arith.constant 0 : i32
    %c0_i32_0 = arith.constant 0 : i32
    return %arg0, %c0_i32 : i32, i32
  }
}

</mosaic_0001>

<bundles_post_ra>
// kernel: deep_q_network.1
= control target key start
LH: loop header
LB: loop body
LE: loop exit
PB: predicated region body
PF: predicated region fallthrough
CT: control target
= control target key end

     0   :  { %v981_v1 = vmov 0.0   ;;  %vm982_vm0 = vmmov 0   ;;  %vm42_vm1 = vcmask 130048   ;;  %s1278_s0 = inlined_call_operand.vmem [shape: bf16[8,16], index: 0, kind: input, shape index: {}]   ;;  %s1279_s1 = inlined_call_operand.vmem [shape: bf16[16,128], index: 1, kind: input, shape index: {}]   ;;  %s1280_s2 = inlined_call_operand.vmem [shape: bf16[128,256], index: 2, kind: input, shape index: {}]   ;;  %s1281_s3 = inlined_call_operand.vmem [shape: bf16[256,256], index: 3, kind: input, shape index: {}]   ;;  %s1282_s4 = inlined_call_operand.vmem [shape: bf16[256,128], index: 4, kind: input, shape index: {}]   ;;  %s1283_s5 = inlined_call_operand.vmem [shape: f32[10,256], index: 5, kind: input, shape index: {}]   ;;  %s1284_s6 = inlined_call_operand.hbm [shape: f32[8,128], index: 6, kind: output, shape index: {}]  }
   0x1   :  { %v862_v0 = vld [vmem:[%s1279_s1] sm:$0xff]   ;;  %852 = vmatprep.subr.bf16.mxu0 %v981_v1  ;;  %854 = vmatprep.mubr.msk.bf16.mxu0 %vm982_vm0, %v981_v1 }
   0x2   :  { %v29_v2 = vld [vmem:[%s1278_s0] sm:$0xf]  ;;  %853 = vmatpush3.bf16.msra.mxu0 %v862_v0 }
   0x5   :  { %855 = vmatmul.mubr.msk.bf16.vlgmr.msra.gmra.mrb[0].mxu0 %vm42_vm1, %v29_v2 }
   0x6   :  { %11 = vsyncpa [#allocation3], 0  ;;  %v32_v3 = vlaneseq  ;;  %v1034_v6 = vld [vmem:[%s1283_s5] sm:$0xff]  ;;  %v866_v15 = vld [vmem:[%s1280_s2 + $0x14] ss:$8 sps:$4 sm:$0xff]   ;;  %v983_v28 = vmov 0  }
   0x7   :  { %v863_v13 = vld [vmem:[%s1280_s2 + $0x4] ss:$8 sps:$4 sm:$0xff]   ;;  %v865_v14 = vld [vmem:[%s1280_s2] ss:$8 sps:$4 sm:$0xff]   ;;  %v868_v16 = vld [vmem:[%s1280_s2 + $0x10] ss:$8 sps:$4 sm:$0xff]   ;;  %245 = vmatprep.mubr.bf16.mxu1 %v983_v28 }
   0x8   :  { %v1026_v4 = vshrl.u32 %v32_v3, 7  ;;  %213 = vmatprep.subr.bf16.mxu1 %v863_v13  ;;  %v869_v21 = vld [vmem:[%s1280_s2 + $0x24] ss:$8 sps:$4 sm:$0xff]   ;;  %v871_v22 = vld [vmem:[%s1280_s2 + $0x20] ss:$8 sps:$4 sm:$0xff]  }
   0x9   :  { %214 = vmatpush1.bf16.msra.mxu1 %v865_v14  ;;  %v872_v23 = vld [vmem:[%s1280_s2 + $0x34] ss:$8 sps:$4 sm:$0xff]   ;;  %v874_v24 = vld [vmem:[%s1280_s2 + $0x30] ss:$8 sps:$4 sm:$0xff]   ;;  %v875_v25 = vld [vmem:[%s1280_s2 + $0x44] ss:$8 sps:$4 sm:$0xff]  }
   0xa   :  { %v1029_v5 = vsub.s32 0, %v1026_v4  ;;  %215 = vmatprep.subr.bf16.mxu1 %v866_v15  ;;  %v877_v26 = vld [vmem:[%s1280_s2 + $0x40] ss:$8 sps:$4 sm:$0xff]   ;;  %v878_v27 = vld [vmem:[%s1280_s2 + $0x54] ss:$8 sps:$4 sm:$0xff]   ;;  %v98_v37 = vsub.s32 1, %v1026_v4 }
   0xb   :  { %v880_v29 = vld [vmem:[%s1280_s2 + $0x50] ss:$8 sps:$4 sm:$0xff]   ;;  %v881_v30 = vld [vmem:[%s1280_s2 + $0x64] ss:$8 sps:$4 sm:$0xff]   ;;  %v883_v31 = vld [vmem:[%s1280_s2 + $0x60] ss:$8 sps:$4 sm:$0xff]  }
   0xc   :  { %v35_v7 = vrot.slane %v1034_v6, %v1029_v5  ;;  %v884_v32 = vld [vmem:[%s1280_s2 + $0x74] ss:$8 sps:$4 sm:$0xff]   ;;  %v886_v33 = vld [vmem:[%s1280_s2 + $0x70] ss:$8 sps:$4 sm:$0xff]   ;;  %v99_v38 = vrot.slane %v1034_v6, %v98_v37  ;;  %v104_v39 = vsub.s32 2, %v1026_v4  ;;  %v127_v47 = vsub.s32 3, %v1026_v4 }
   0xd   :  { %216 = vmatpush1.bf16.msra.mxu1 %v868_v16  ;;  %v1096_v48 = vld [vmem:[%s1283_s5 + $0x8] sm:$0xff]  ;;  %v892_v60 = vld [vmem:[%s1281_s3 + $0x14] ss:$8 sps:$4 sm:$0xff]   ;;  %v890_v61 = vld [vmem:[%s1281_s3 + $0x10] ss:$8 sps:$4 sm:$0xff]  }
   0xe   :  { %217 = vmatprep.subr.bf16.mxu1 %v869_v21  ;;  %v105_v42 = vrot.slane %v1034_v6, %v104_v39  ;;  %v128_v49 = vrot.slane %v1034_v6, %v127_v47  ;;  %v132_v50 = vrot.slane %v1096_v48, %v127_v47  ;;  %v887_v58 = vld [vmem:[%s1281_s3] ss:$8 sps:$4 sm:$0xff]   ;;  %v889_v59 = vld [vmem:[%s1281_s3 + $0x4] ss:$8 sps:$4 sm:$0xff]   ;;  %v898_v0 = vld [vmem:[%s1281_s3 + $0x34] ss:$8 sps:$4 sm:$0xff]  }
   0xf   :  { %494 = vmatprep.subr.bf16.mxu0 %v889_v59  ;;  %v895_v62 = vld [vmem:[%s1281_s3 + $0x24] ss:$8 sps:$4 sm:$0xff]   ;;  %v893_v63 = vld [vmem:[%s1281_s3 + $0x20] ss:$8 sps:$4 sm:$0xff]   ;;  %v896_v1 = vld [vmem:[%s1281_s3 + $0x30] ss:$8 sps:$4 sm:$0xff]  }
  0x10   :  { %495 = vmatpush1.bf16.msra.mxu0 %v887_v58  ;;  %v901_v2 = vld [vmem:[%s1281_s3 + $0x44] ss:$8 sps:$4 sm:$0xff]   ;;  %v899_v3 = vld [vmem:[%s1281_s3 + $0x40] ss:$8 sps:$4 sm:$0xff]   ;;  %v916_v15 = vld [vmem:[%s1281_s3 + $0x94] ss:$8 sps:$4 sm:$0xff]  }
  0x11   :  { %218 = vmatpush1.bf16.msra.mxu1 %v871_v22  ;;  %496 = vmatprep.subr.bf16.mxu0 %v892_v60  ;;  %v913_v13 = vld [vmem:[%s1281_s3 + $0x84] ss:$8 sps:$4 sm:$0xff]   ;;  %v911_v14 = vld [vmem:[%s1281_s3 + $0x80] ss:$8 sps:$4 sm:$0xff]   ;;  %v914_v16 = vld [vmem:[%s1281_s3 + $0x90] ss:$8 sps:$4 sm:$0xff]  }
  0x12   :  { %219 = vmatprep.subr.bf16.mxu1 %v872_v23  ;;  %v925_v28 = vld [vmem:[%s1281_s3 + $0xc4] ss:$8 sps:$4 sm:$0xff]   ;;  %v328_v58 = vsub.s32 6, %v1026_v4 }
  0x14   :  { %497 = vmatpush1.bf16.msra.mxu0 %v890_v61  ;;  %v329_v59 = vrot.slane %v1034_v6, %v328_v58  ;;  %v333_v60 = vrot.slane %v1096_v48, %v328_v58 }
  0x15   :  { %220 = vmatpush1.bf16.msra.mxu1 %v874_v24  ;;  %498 = vmatprep.subr.bf16.mxu0 %v895_v62  ;;  %v919_v24 = vld [vmem:[%s1281_s3 + $0xa4] ss:$8 sps:$4 sm:$0xff]  }
  0x16   :  { %221 = vmatprep.subr.bf16.mxu1 %v875_v25  ;;  %v917_v25 = vld [vmem:[%s1281_s3 + $0xa0] ss:$8 sps:$4 sm:$0xff]  }
  0x18   :  { %499 = vmatpush1.bf16.msra.mxu0 %v893_v63 }
  0x19   :  { %222 = vmatpush1.bf16.msra.mxu1 %v877_v26  ;;  %500 = vmatprep.subr.bf16.mxu0 %v898_v0  ;;  %v920_v26 = vld [vmem:[%s1281_s3 + $0xb0] ss:$8 sps:$4 sm:$0xff]  }
  0x1a   :  { %223 = vmatprep.subr.bf16.mxu1 %v878_v27  ;;  %v922_v27 = vld [vmem:[%s1281_s3 + $0xb4] ss:$8 sps:$4 sm:$0xff]  }
  0x1c   :  { %501 = vmatpush1.bf16.msra.mxu0 %v896_v1 }
  0x1d   :  { %224 = vmatpush1.bf16.msra.mxu1 %v880_v29  ;;  %502 = vmatprep.subr.bf16.mxu0 %v901_v2  ;;  %v923_v29 = vld [vmem:[%s1281_s3 + $0xc0] ss:$8 sps:$4 sm:$0xff]  }
  0x1e   :  { %225 = vmatprep.subr.bf16.mxu1 %v881_v30  ;;  %v928_v30 = vld [vmem:[%s1281_s3 + $0xd4] ss:$8 sps:$4 sm:$0xff]  }
  0x20   :  { %503 = vmatpush1.bf16.msra.mxu0 %v899_v3 }
  0x21   :  { %226 = vmatpush1.bf16.msra.mxu1 %v883_v31  ;;  %v926_v31 = vld [vmem:[%s1281_s3 + $0xd0] ss:$8 sps:$4 sm:$0xff]  }
  0x22   :  { %227 = vmatprep.subr.bf16.mxu1 %v884_v32  ;;  %v931_v32 = vld [vmem:[%s1281_s3 + $0xe4] ss:$8 sps:$4 sm:$0xff]  }
  0x25   :  { %228 = vmatpush1.bf16.msra.mxu1 %v886_v33  ;;  %v929_v33 = vld [vmem:[%s1281_s3 + $0xe0] ss:$8 sps:$4 sm:$0xff]  }
  0xd8   :  { %v80_v8 = vpop.f32.mrb[0].mxu0 }
  0xd9   :  { %v81_v9 = vadd.f32 %v80_v8, %v35_v7  ;;  %v856_v10 = vpop.f32.mrb[1].mxu0  ;;  %v904_v7 = vld [vmem:[%s1281_s3 + $0x54] ss:$8 sps:$4 sm:$0xff]   ;;  %v902_v8 = vld [vmem:[%s1281_s3 + $0x50] ss:$8 sps:$4 sm:$0xff]  }
  0xda   :  { %v83_v11 = vpop.f32.mrb[2].mxu0  ;;  %504 = vmatprep.subr.bf16.mxu0 %v904_v7  ;;  %v905_v10 = vld [vmem:[%s1281_s3 + $0x60] ss:$8 sps:$4 sm:$0xff]  }
  0xdb   :  { %v857_v12 = vpop.f32.mrb[3].mxu0  ;;  %86 = vadd.xlane.f32.xlu0 %v81_v9  ;;  %505 = vmatpush1.bf16.msra.mxu0 %v902_v8  ;;  %v910_v11 = vld [vmem:[%s1281_s3 + $0x74] ss:$8 sps:$4 sm:$0xff]   ;;  %v935_v7 = vld [vmem:[%s1282_s4 + $0x40] sm:$0xff]  }
  0xdc   :  { %v908_v12 = vld [vmem:[%s1281_s3 + $0x70] ss:$8 sps:$4 sm:$0xff]   ;;  %v936_v8 = vld [vmem:[%s1282_s4] sm:$0xff]   ;;  %830 = vmatprep.subr.bf16.mxu1 %v935_v7 }
 0x168   :  { %v87_v17 = vpop.xlane.xlu0 %86 }
 0x169   :  { %v88_v18 = vmul.f32 0.0078125, %v87_v17 }
 0x16b   :  { %v89_v19 = vsub.f32 %v81_v9, %v88_v18  ;;  %v907_v9 = vld [vmem:[%s1281_s3 + $0x64] ss:$8 sps:$4 sm:$0xff]  }
 0x16c   :  { %506 = vmatprep.subr.bf16.mxu0 %v907_v9  ;;  %v937_v9 = vld [vmem:[%s1282_s4 + $0x48] sm:$0xff]  }
 0x16d   :  { %v90_v20 = vmul.f32 %v89_v19, %v89_v19  ;;  %507 = vmatpush1.bf16.msra.mxu0 %v905_v10  ;;  %v938_v10 = vld [vmem:[%s1282_s4 + $0x8] sm:$0xff]  }
 0x16e   :  { %508 = vmatprep.subr.bf16.mxu0 %v910_v11 }
 0x16f   :  { %91 = vadd.xlane.f32.xlu0 %v90_v20 }
 0x171   :  { %509 = vmatpush1.bf16.msra.mxu0 %v908_v12 }
 0x172   :  { %510 = vmatprep.subr.bf16.mxu0 %v913_v13 }
 0x175   :  { %511 = vmatpush1.bf16.msra.mxu0 %v911_v14 }
 0x176   :  { %512 = vmatprep.subr.bf16.mxu0 %v916_v15 }
 0x179   :  { %513 = vmatpush1.bf16.msra.mxu0 %v914_v16 }
 0x17a   :  { %514 = vmatprep.subr.bf16.mxu0 %v919_v24  ;;  %v945_v24 = vld [vmem:[%s1282_s4 + $0x68] sm:$0xff]  }
 0x17d   :  { %515 = vmatpush1.bf16.msra.mxu0 %v917_v25  ;;  %v946_v25 = vld [vmem:[%s1282_s4 + $0x28] sm:$0xff]  }
 0x17e   :  { %516 = vmatprep.subr.bf16.mxu0 %v922_v27  ;;  %v948_v27 = vld [vmem:[%s1282_s4 + $0x30] sm:$0xff]  }
 0x181   :  { %517 = vmatpush1.bf16.msra.mxu0 %v920_v26  ;;  %v947_v26 = vld [vmem:[%s1282_s4 + $0x70] sm:$0xff]  }
 0x182   :  { %518 = vmatprep.subr.bf16.mxu0 %v925_v28  ;;  %v949_v28 = vld [vmem:[%s1282_s4 + $0x78] sm:$0xff]  }
 0x185   :  { %519 = vmatpush1.bf16.msra.mxu0 %v923_v29  ;;  %v950_v29 = vld [vmem:[%s1282_s4 + $0x38] sm:$0xff]  }
 0x186   :  { %520 = vmatprep.subr.bf16.mxu0 %v928_v30 }
 0x189   :  { %521 = vmatpush1.bf16.msra.mxu0 %v926_v31 }
 0x18a   :  { %522 = vmatprep.subr.bf16.mxu0 %v931_v32 }
 0x18d   :  { %523 = vmatpush1.bf16.msra.mxu0 %v929_v33  ;;  %v551_v33 = vsub.s32 7, %v1026_v4 }
 0x1fc   :  { %v92_v34 = vpop.xlane.xlu0 %91 }
 0x1fd   :  { %v93_v35 = vmul.f32 0.0078125, %v92_v34  ;;  %v934_v34 = vld [vmem:[%s1281_s3 + $0xf4] ss:$8 sps:$4 sm:$0xff]  }
 0x1fe   :  { %524 = vmatprep.subr.bf16.mxu0 %v934_v34  ;;  %v552_v34 = vrot.slane %v1034_v6, %v551_v33 }
 0x1ff   :  { %v94_v36 = vadd.f32 1e-05, %v93_v35  ;;  %v932_v35 = vld [vmem:[%s1281_s3 + $0xf0] ss:$8 sps:$4 sm:$0xff]  }
 0x200   :  { %525 = vmatpush1.bf16.msra.mxu0 %v932_v35  ;;  %v556_v35 = vrot.slane %v1096_v48, %v551_v33 }
 0x201   :  { %951 = vrsqrt.f32 %v94_v36 }
 0x20b   :  { %v952_v40 = vpop.eup %951 }
 0x20c   :  { %v100_v41 = vmul.f32 %v952_v40, %v99_v38  ;;  %v270_v40 = vsub.s32 4, %v1026_v4 }
 0x20e   :  { %v101_v43 = vmul.f32 %v100_v41, %v89_v19  ;;  %v275_v41 = vrot.slane %v1096_v48, %v270_v40 }
 0x210   :  { %v106_v44 = vadd.f32 %v105_v42, %v101_v43  ;;  %v282_v42 = vsub.s32 5, %v1026_v4  ;;  %v271_v43 = vrot.slane %v1034_v6, %v270_v40 }
 0x212   :  { %v107_v45 = vmax.f32 %v106_v44, 0.0 }
 0x214   :  { %v108_v46 = vpack.c.bf16 %v107_v45, %v107_v45 }
 0x216   :  { %246 = vmatmul.mubr.bf16.vlgmr.msra.gmra.mrb[0].mxu1 %v108_v46  ;;  %v287_v46 = vrot.slane %v1096_v48, %v282_v42 }
 0x217   :  { %831 = vmatpush3.bf16.msra.mxu1 %v936_v8 }
 0x218   :  { %832 = vmatprep.subr.bf16.mxu1 %v937_v9 }
 0x21b   :  { %833 = vmatpush3.bf16.msra.mxu1 %v938_v10 }
 0x2e9   :  { %v247_v51 = vpop.f32.mrb[0].mxu1 }
 0x2ea   :  { %v248_v52 = vadd.f32 %v247_v51, %v128_v49  ;;  %v249_v53 = vpop.f32.mrb[1].mxu1  ;;  %v283_v49 = vrot.slane %v1034_v6, %v282_v42 }
 0x2eb   :  { %v250_v54 = vadd.f32 %v249_v53, %v132_v50  ;;  %v251_v55 = vpop.f32.mrb[2].mxu1 }
 0x2ec   :  { %v252_v56 = vpop.f32.mrb[3].mxu1 }
 0x2ed   :  { %v254_v57 = vadd.f32 %v250_v54, %v248_v52 }
 0x2ef   :  { %255 = vadd.xlane.f32.xlu1 %v254_v57 }
 0x37c   :  { %v256_v17 = vpop.xlane.xlu1 %255 }
 0x37d   :  { %v257_v18 = vmul.f32 0.00390625, %v256_v17 }
 0x37f   :  { %v258_v19 = vsub.f32 %v248_v52, %v257_v18  ;;  %v259_v20 = vsub.f32 %v250_v54, %v257_v18  ;;  %v939_v18 = vld [vmem:[%s1282_s4 + $0x50] sm:$0xff]  }
 0x380   :  { %834 = vmatprep.subr.bf16.mxu1 %v939_v18 }
 0x381   :  { %v260_v21 = vmul.f32 %v258_v19, %v258_v19  ;;  %v261_v22 = vmul.f32 %v259_v20, %v259_v20 }
 0x383   :  { %v262_v23 = vadd.f32 %v261_v22, %v260_v21  ;;  %v942_v21 = vld [vmem:[%s1282_s4 + $0x18] sm:$0xff]   ;;  %v943_v22 = vld [vmem:[%s1282_s4 + $0x60] sm:$0xff]  }
 0x385   :  { %263 = vadd.xlane.f32.xlu1 %v262_v23  ;;  %v944_v23 = vld [vmem:[%s1282_s4 + $0x20] sm:$0xff]  }
 0x412   :  { %v264_v36 = vpop.xlane.xlu1 %263 }
 0x413   :  { %v265_v38 = vmul.f32 0.00390625, %v264_v36  ;;  %v28_v36 = vld [vmem:[%s1283_s5 + $0x18] sm:$0x3] }
 0x414   :  { %v568_v42 = vrot.slane %v28_v36, %v1029_v5 }
 0x415   :  { %v266_v39 = vadd.f32 1e-05, %v265_v38  ;;  %v27_v38 = vld [vmem:[%s1283_s5 + $0x10] sm:$0x3] }
 0x417   :  { %953 = vrsqrt.f32 %v266_v39 }
 0x421   :  { %v954_v44 = vpop.eup %953 }
 0x422   :  { %v277_v45 = vmul.f32 %v954_v44, %v275_v41  ;;  %v276_v47 = vmul.f32 %v954_v44, %v271_v43  ;;  %v564_v43 = vrot.slane %v27_v38, %v1029_v5 }
 0x424   :  { %v279_v50 = vmul.f32 %v277_v45, %v259_v20  ;;  %v278_v51 = vmul.f32 %v276_v47, %v258_v19  ;;  %v940_v19 = vld [vmem:[%s1282_s4 + $0x10] sm:$0xff]   ;;  %v941_v20 = vld [vmem:[%s1282_s4 + $0x58] sm:$0xff]   ;;  %s984_s4 = smov [#allocation2]  }
 0x425   :  { %835 = vmatpush3.bf16.msra.mxu1 %v940_v19  ;;  %s754_s5 = sshll.u32 %s984_s4, 4  ;;  %s755_s5 = int_to_ptr.vmem [resolvable:$true] %s754_s5 }
 0x426   :  { %v289_v52 = vadd.f32 %v287_v46, %v279_v50  ;;  %v288_v53 = vadd.f32 %v283_v49, %v278_v51  ;;  %836 = vmatprep.subr.bf16.mxu1 %v941_v20  ;;  %s957_s25 = scalar_lea.vmem %s755_s5, 128  ;;  %p962_p1 = scmp.lt.s32.totalorder %s755_s5, %s755_s5 }
 0x427   :  { %p958_p0 = scmp.ne.s32.totalorder %s755_s5, %s957_s25  ;;  %p963_p2 = scmp.lt.s32.totalorder %s957_s25, %s957_s25 }
 0x428   :  { %v291_v54 = vmax.f32 %v289_v52, 0.0  ;;  %v290_v55 = vmax.f32 %v288_v53, 0.0  ;;  %v610_v52 = vrot.slane %v27_v38, %v98_v37 }
 0x429   :  { %837 = vmatpush3.bf16.msra.mxu1 %v942_v21  ;;  %p964_p3 = por %p963_p2, %p962_p1 }
 0x42a   :  { %v293_v56 = vpack.c.bf16 %v291_v54, %v291_v54  ;;  %v292_v57 = vpack.c.bf16 %v290_v55, %v290_v55  ;;  %838 = vmatprep.subr.bf16.mxu1 %v943_v22 }
 0x42b   :  { %p965_p4 = pnand %p964_p3, %p958_p0 }
 0x42c   :  { %526 = vmatprep.mubr.bf16.mxu0 %v293_v56 }
 0x42d   :  { %527 = vmatmul.mubr.bf16.vlgmr.msra.gmra.mrb[4].mxu0 %v292_v57  ;;  %839 = vmatpush3.bf16.msra.mxu1 %v944_v23 }
 0x42e   :  { %840 = vmatprep.subr.bf16.mxu1 %v945_v24 }
 0x431   :  { %841 = vmatpush3.bf16.msra.mxu1 %v946_v25 }
 0x432   :  { %842 = vmatprep.subr.bf16.mxu1 %v947_v26 }
 0x435   :  { %843 = vmatpush3.bf16.msra.mxu1 %v948_v27 }
 0x436   :  { %844 = vmatprep.subr.bf16.mxu1 %v949_v28 }
 0x439   :  { %845 = vmatpush3.bf16.msra.mxu1 %v950_v29 }
 0x500   :  { %v528_v61 = vpop.f32.mrb[4].mxu0 }
 0x501   :  { %v529_v62 = vadd.f32 %v528_v61, %v329_v59  ;;  %v530_v63 = vpop.f32.mrb[5].mxu0 }
 0x502   :  { %v531_v0 = vadd.f32 %v530_v63, %v333_v60  ;;  %v532_v1 = vpop.f32.mrb[6].mxu0 }
 0x503   :  { %v533_v2 = vpop.f32.mrb[7].mxu0 }
 0x504   :  { %v535_v3 = vadd.f32 %v531_v0, %v529_v62 }
 0x506   :  { %536 = vadd.xlane.f32.xlu0 %v535_v3 }
 0x593   :  { %v537_v11 = vpop.xlane.xlu0 %536 }
 0x594   :  { %v538_v12 = vmul.f32 0.00390625, %v537_v11 }
 0x596   :  { %v539_v13 = vsub.f32 %v529_v62, %v538_v12  ;;  %v540_v14 = vsub.f32 %v531_v0, %v538_v12 }
 0x598   :  { %v541_v15 = vmul.f32 %v539_v13, %v539_v13  ;;  %v542_v16 = vmul.f32 %v540_v14, %v540_v14 }
 0x59a   :  { %v543_v17 = vadd.f32 %v542_v16, %v541_v15 }
 0x59c   :  { %544 = vadd.xlane.f32.xlu1 %v543_v17 }
 0x629   :  { %v545_v30 = vpop.xlane.xlu1 %544 }
 0x62a   :  { %v546_v31 = vmul.f32 0.00390625, %v545_v30 }
 0x62c   :  { %v547_v32 = vadd.f32 1e-05, %v546_v31 }
 0x62e   :  { %955 = vrsqrt.f32 %v547_v32 }
 0x638   :  { %v956_v39 = vpop.eup %955 }
 0x639   :  { %v557_v40 = vmul.f32 %v956_v39, %v552_v34  ;;  %v558_v41 = vmul.f32 %v956_v39, %v556_v35 }
 0x63b   :  { %v560_v44 = vmul.f32 %v558_v41, %v540_v14  ;;  %v559_v45 = vmul.f32 %v557_v40, %v539_v13 }
 0x63d   :  { %v570_v6 = vadd.f32 %v568_v42, %v560_v44  ;;  %v569_v46 = vadd.f32 %v564_v43, %v559_v45 }
 0x63f   :  { %v572_v48 = vmax.f32 %v570_v6, 0.0  ;;  %v571_v47 = vmax.f32 %v569_v46, 0.0 }
 0x641   :  { %v574_v49 = vpack.c.bf16 %v572_v48, %v572_v48  ;;  %v573_v50 = vpack.c.bf16 %v571_v47, %v571_v47 }
 0x643   :  { %739 = vmatprep.mubr.bf16.mxu1 %v574_v49 }
 0x644   :  { %740 = vmatmul.mubr.bf16.vlgmr.msra.gmra.mrb[4].mxu1 %v573_v50 }
 0x717   :  { %v846_v51 = vpop.f32.mrb[4].mxu1 }
 0x718   :  { %v847_v53 = vpop.f32.mrb[5].mxu1 }
 0x719   :  { %v848_v54 = vadd.f32 %v847_v53, %v846_v51  ;;  %v849_v55 = vpop.f32.mrb[6].mxu1 }
 0x71a   :  { %v850_v5 = vpop.f32.mrb[7].mxu1 }
 0x71b   :  { %v742_v56 = vadd.f32 %v848_v54, %v610_v52 }
 0x71d   :  { %747 = vst [vmem:[#allocation2] sm:$0xff] %v742_v56 }
 0x71e   :  { %968 = shalt.err (!%p965_p4)
}
 0x71f   :  { %s969_s26 = scalar_lea.hbm %s1284_s6, 128 }
 0x720   :  { %p970_p5 = scmp.ne.s32.totalorder %s1284_s6, %s969_s26  ;;  %p973_p6 = scmp.lt.u32.totalorder %s969_s26, %s1284_s6 }
 0x722   :  { %p975_p7 = pnand %p973_p6, %p970_p5 }
 0x724   :  { %978 = shalt.err (!%p975_p7)
}
 0x725   :  { %757 = dma.vmem_to_hbm [thread:$0]  %s755_s5, 128, %s1284_s6, [#allocation3]  }
 0x726   :  { %979 = dma.done.wait [#allocation3], 128  }
 0x727   :  { %980 = vsyncadd [#allocation3], 4294967168 }
 0x728   :  { %761 = vsyncpa [#allocation3], 1 }

</bundles_post_ra>
